<compile_context>
chip_gen: v6e
topology: v6e:2x2x1
jax: 0.10.0
libtpu: 0.0.40
codegen_flags: <defaults>
</compile_context>

<pallas_src>
import functools

import jax
import jax.numpy as jnp
import numpy as np
from jax import lax
from jax.experimental import pallas as pl
from jax.experimental.pallas import tpu as pltpu

LANE = 128


def _round_up(a, b):
    return (a + b - 1) // b * b


# ----------------------------------------------------------------------------
# Pallas kernel: one grid step = (batch b, output-length tile t).
# ----------------------------------------------------------------------------
def _fused_conv1d_kernel(*refs, k, stride, dilation, merged):
    """refs (merged):   x_ref [win_rows, C], w_ref [k*C, O_pad],
                        b_ref [1, O_pad] (f32), o_ref [T_ol, O_pad]
       refs (unmerged): x_ref, w_ref, wd_ref [k*C, r_pad],
                        wu_ref [r_pad, O_pad] (scale folded), b_ref, o_ref
    """
    if merged:
        x_ref, w_ref, b_ref, o_ref = refs
        wd_ref = wu_ref = None
    else:
        x_ref, w_ref, wd_ref, wu_ref, b_ref, o_ref = refs

    t_ol = o_ref.shape[0]

    # Build the [T_ol, k*C] im2col tile once in VMEM (static offsets: the tap
    # loop is a small, fully unrolled Python loop).  Lane index = tap*C + c,
    # matching the [k*C, O] weight layout prepared by the wrapper.
    taps = []
    for tt in range(k):
        lo = tt * dilation
        if stride == 1:
            taps.append(x_ref[lo:lo + t_ol, :])
        else:
            taps.append(x_ref[pl.ds(lo, t_ol, stride), :])
    im2col = taps[0] if k == 1 else jnp.concatenate(taps, axis=-1)

    # Single k*C-contraction MXU pass; f32 accumulation.
    acc = jnp.dot(im2col, w_ref[...], preferred_element_type=jnp.float32)

    if not merged:
        down = jnp.dot(im2col, wd_ref[...], preferred_element_type=jnp.float32)
        acc = acc + jnp.dot(down.astype(wu_ref.dtype), wu_ref[...],
                            preferred_element_type=jnp.float32)

    # Bias (f32) fused with the final cast/store.
    o_ref[...] = (acc + b_ref[...]).astype(o_ref.dtype)


# ----------------------------------------------------------------------------
# Wrapper
# ----------------------------------------------------------------------------
def lora_conv1d_forward(x, w_conv, b_conv, w_down, w_up, *,
                        stride=1, padding=0, dilation=1, scale=1.0,
                        merge_lora=True, compute_dtype=None, ol_tile=None,
                        input_channels_last=False, output_channels_last=False):
    """x: [N, C, L] (PyTorch NCL) or [N, L, C] if input_channels_last.
       Weights in PyTorch layout: w_conv [O, C, k], b_conv [O] (or None),
       w_down [r, C, k], w_up [O, r, 1].
       Returns [N, O, OL] (or [N, OL, O] if output_channels_last)."""
    if input_channels_last:
        n, l, c = x.shape
    else:
        n, c, l = x.shape
    o, ci, k = w_conv.shape
    assert ci == c, "grouped conv (groups != 1) not supported"  # TODO(synk)
    r = w_down.shape[0]

    compute_dtype = jnp.dtype(compute_dtype) if compute_dtype is not None \
        else jnp.dtype(x.dtype)
    out_dtype = x.dtype
    q = 16 if compute_dtype == jnp.bfloat16 else 8      # sublane quantum

    ol = (l + 2 * padding - dilation * (k - 1) - 1) // stride + 1
    assert ol > 0

    # Lane-dense output channels; aim at the 256-wide MXU when O > 128.
    o_pad = _round_up(o, LANE) if o <= LANE else _round_up(o, 2 * LANE)

    # OL tiling (per-generation knob: ~256 keeps the f32 accumulator near
    # 128 KiB at O_pad=128 and bounds per-step VMEM on v7x; 512-1024 is fine
    # on v5e/v6e's 128 MiB VMEM).
    if ol_tile is None:
        ol_tile = 256
    t_ol = min(_round_up(ol, q), _round_up(ol_tile, q))
    num_tiles = pl.cdiv(ol, t_ol)
    ol_pad = num_tiles * t_ol
    win_rows = (t_ol - 1) * stride + (k - 1) * dilation + 1
    l_need = (num_tiles - 1) * t_ol * stride + win_rows
    l_pad = l + 2 * padding
    extra = max(0, l_need - l_pad)

    # ---- input prep: pad (+ transpose for NCL) + haloed tiling, all one
    # fused XLA producer pass over x.  No k-fold im2col in HBM. -------------
    if input_channels_last:
        x_nlc = jnp.pad(x, ((0, 0), (padding, padding + extra), (0, 0)))
    else:
        x_nlc = jnp.transpose(
            jnp.pad(x, ((0, 0), (0, 0), (padding, padding + extra))),
            (0, 2, 1))
    x_nlc = x_nlc.astype(compute_dtype)
    if num_tiles == 1:
        x_tiles = x_nlc[:, None, :win_rows, :]                # [N,1,win,C]
    else:
        x_tiles = jnp.stack(
            [lax.slice_in_dim(x_nlc, t * t_ol * stride,
                              t * t_ol * stride + win_rows, axis=1)
             for t in range(num_tiles)], axis=1)              # [N,T,win,C]

    # ---- weight prep -------------------------------------------------------
    if merge_lora:
        # Exact for this module (no dropout in forward, selector == Identity):
        # same math as module.merge_lora_weights().
        delta = (w_up.reshape(o, r).astype(jnp.float32)
                 @ w_down.reshape(r, c * k).astype(jnp.float32)).reshape(o, c, k)
        w_main = w_conv.astype(jnp.float32) + scale * delta
    else:
        w_main = w_conv
    # [O, C, k] -> [k*C, O_pad] with row index tap*C + c (matches im2col lanes)
    w_kc = jnp.transpose(w_main, (2, 1, 0)).reshape(k * c, o)
    w_kc = jnp.pad(w_kc, ((0, 0), (0, o_pad - o))).astype(compute_dtype)

    if b_conv is None:
        b_conv = jnp.zeros((o,), jnp.float32)
    bias = jnp.pad(b_conv.astype(jnp.float32),
                   (0, o_pad - o)).reshape(1, o_pad)          # bias stays f32

    operands = [x_tiles, w_kc]
    in_specs = [
        pl.BlockSpec((None, None, win_rows, c), lambda b, t: (b, t, 0, 0)),
        pl.BlockSpec((k * c, o_pad), lambda b, t: (0, 0)),
    ]
    extra_flops = 0
    extra_bytes = 0
    itemsize = jnp.dtype(compute_dtype).itemsize
    if not merge_lora:
        r_pad = _round_up(r, q)
        wd_kc = jnp.transpose(w_down, (2, 1, 0)).reshape(k * c, r)
        wd_kc = jnp.pad(wd_kc, ((0, 0), (0, r_pad - r))).astype(compute_dtype)
        wu = jnp.pad((scale * w_up.reshape(o, r)).T,
                     ((0, r_pad - r), (0, o_pad - o))).astype(compute_dtype)
        operands += [wd_kc, wu]
        in_specs += [
            pl.BlockSpec((k * c, r_pad), lambda b, t: (0, 0)),
            pl.BlockSpec((r_pad, o_pad), lambda b, t: (0, 0)),
        ]
        extra_flops = (2 * n * ol_pad * (k * c) * r_pad
                       + 2 * n * ol_pad * r_pad * o_pad)
        extra_bytes = (wd_kc.size + wu.size) * itemsize
    operands.append(bias)
    in_specs.append(pl.BlockSpec((1, o_pad), lambda b, t: (0, 0)))

    out_itemsize = jnp.dtype(out_dtype).itemsize
    cost = pl.CostEstimate(
        flops=int(2 * n * ol_pad * (k * c) * o_pad + extra_flops),
        transcendentals=0,
        bytes_accessed=int((x_tiles.size + w_kc.size) * itemsize
                           + bias.size * 4
                           + n * ol_pad * o_pad * out_itemsize + extra_bytes),
    )

    # Real per-step footprint (double-buffered tiles + resident weights +
    # f32 accumulator + im2col staging), generous margin, capped for v7x.
    w_bytes = (w_kc.size * itemsize + bias.size * 4 + extra_bytes)
    vmem_bytes = (2 * win_rows * c * itemsize          # input tile x2
                  + 2 * t_ol * o_pad * out_itemsize    # output tile x2
                  + 2 * w_bytes                        # weights (2 bufs)
                  + t_ol * o_pad * 4                   # f32 accumulator
                  + t_ol * k * c * 4)                  # im2col staging
    vmem_limit = int(min(max(2 * vmem_bytes + (4 << 20), 8 << 20), 48 << 20))

    out = pl.pallas_call(
        functools.partial(_fused_conv1d_kernel, k=k, stride=stride,
                          dilation=dilation, merged=merge_lora),
        out_shape=jax.ShapeDtypeStruct((n, ol_pad, o_pad), out_dtype),
        grid_spec=pltpu.PrefetchScalarGridSpec(
            num_scalar_prefetch=0,
            grid=(n, num_tiles),                       # both axes independent
            in_specs=in_specs,
            out_specs=pl.BlockSpec((None, t_ol, o_pad), lambda b, t: (b, t, 0)),
        ),
        compiler_params=pltpu.CompilerParams(
            dimension_semantics=("parallel", "parallel"),
            vmem_limit_bytes=vmem_limit,
        ),
        cost_estimate=cost,
    )(*operands)

    out = out[:, :ol, :o]                              # drop sublane/lane pad
    if output_channels_last:
        return out                                     # [N, OL, O]
    return jnp.transpose(out, (0, 2, 1))               # [N, O, OL]


# ----------------------------------------------------------------------------
# Pure-JAX reference (independent: lax.conv_general_dilated)
# ----------------------------------------------------------------------------
def reference_forward(x, w_conv, b_conv, w_down, w_up, *,
                      stride, padding, dilation, scale):
    dn = ("NCH", "OIH", "NCH")
    pad = [(padding, padding)]
    conv = lax.conv_general_dilated(x, w_conv, (stride,), pad,
                                    rhs_dilation=(dilation,),
                                    dimension_numbers=dn)
    conv = conv + b_conv[None, :, None]
    down = lax.conv_general_dilated(x, w_down, (stride,), pad,
                                    rhs_dilation=(dilation,),
                                    dimension_numbers=dn)
    up = lax.conv_general_dilated(down, w_up, (1,), [(0, 0)],
                                  dimension_numbers=dn)
    return conv + scale * up


if __name__ == "__main__":
    # Module config: Conv1d(4 -> 8, k=3, stride=1, pad=1), r=4, scale=0.5
    in_channels, out_channels = 4, 8
    kernel_size = 3
    r = 4
    scale = 0.5

    key = jax.random.PRNGKey(0)
    kx, kc, kb, kd, ku = jax.random.split(key, 5)

    x = jax.random.normal(kx, (2, in_channels, 16), dtype=jnp.float32)

    fan_in = in_channels * kernel_size
    bound = 1.0 / np.sqrt(fan_in)
    w_conv = jax.random.uniform(kc, (out_channels, in_channels, kernel_size),
                                minval=-bound, maxval=bound, dtype=jnp.float32)
    b_conv = jax.random.uniform(kb, (out_channels,),
                                minval=-bound, maxval=bound, dtype=jnp.float32)
    # The module xavier-inits BOTH LoRA convs (lora_up is not zero-init).
    std_down = np.sqrt(2.0 / (in_channels * kernel_size + r * kernel_size))
    std_up = np.sqrt(2.0 / (r + out_channels))
    w_down = std_down * jax.random.normal(
        kd, (r, in_channels, kernel_size), dtype=jnp.float32)
    w_up = std_up * jax.random.normal(ku, (out_channels, r, 1),
                                      dtype=jnp.float32)

    configs = [
        dict(stride=1, padding=1, dilation=1),
        dict(stride=1, padding=2, dilation=2),
    ]
    for cfg in configs:
        ref = jax.block_until_ready(
            reference_forward(x, w_conv, b_conv, w_down, w_up, scale=scale, **cfg))

        # f32: merged (eval fast path) and unmerged fused path.
        for merge in (True, False):
            out = lora_conv1d_forward(x, w_conv, b_conv, w_down, w_up,
                                      scale=scale, merge_lora=merge, **cfg)
            out = jax.block_until_ready(out)
            np.testing.assert_allclose(np.asarray(out), np.asarray(ref),
                                       rtol=1e-4, atol=1e-5)

    # channels-last in/out path (skips the NCL<->NLC HBM round trips).
    cfg = configs[0]
    ref = reference_forward(x, w_conv, b_conv, w_down, w_up, scale=scale, **cfg)
    out_cl = lora_conv1d_forward(jnp.transpose(x, (0, 2, 1)), w_conv, b_conv,
                                 w_down, w_up, scale=scale, merge_lora=True,
                                 input_channels_last=True,
                                 output_channels_last=True, **cfg)
    out_cl = jax.block_until_ready(out_cl)
    np.testing.assert_allclose(np.asarray(jnp.transpose(out_cl, (0, 2, 1))),
                               np.asarray(ref), rtol=1e-4, atol=1e-5)

    # bf16 operands, f32 accumulation (looser tolerance).
    out_bf = lora_conv1d_forward(x, w_conv, b_conv, w_down, w_up,
                                 scale=scale, merge_lora=True,
                                 compute_dtype=jnp.bfloat16, **cfg)
    out_bf = jax.block_until_ready(out_bf)
    np.testing.assert_allclose(np.asarray(out_bf), np.asarray(ref),
                               rtol=5e-2, atol=5e-2)

    print("KERNEL_OK")
</pallas_src>

<mosaic_0001>
module attributes {stable_mosaic.version = 11 : i64} {
  func.func @_fused_conv1d_kernel(%arg0: i32, %arg1: i32, %arg2: memref<1x1x18x4xf32, #tpu.memory_space<vmem>>, %arg3: memref<12x128xf32, #tpu.memory_space<vmem>>, %arg4: memref<1x128xf32, #tpu.memory_space<vmem>>, %arg5: memref<1x16x128xf32, #tpu.memory_space<vmem>>) attributes {dimension_semantics = [#tpu.dimension_semantics<parallel>, #tpu.dimension_semantics<parallel>], iteration_bounds = array<i64: 2, 1>, scalar_prefetch = 0 : i64, scratch_operands = 0 : i64, tpu.core_type = #tpu.core_type<tc>, window_params = [{transform_indices = @transform_0, window_bounds = array<i64: 1, 1, 18, 4>}, {pipeline_mode = #tpu.pipeline_mode<synchronous>, transform_indices = @transform_1, window_bounds = array<i64: 12, 128>}, {pipeline_mode = #tpu.pipeline_mode<synchronous>, transform_indices = @transform_2, window_bounds = array<i64: 1, 128>}, {transform_indices = @transform_3, window_bounds = array<i64: 1, 16, 128>}]} {
    %c0 = arith.constant 0 : index
    %c0_0 = arith.constant 0 : index
    %c0_1 = arith.constant 0 : index
    %c0_2 = arith.constant 0 : index
    %0 = vector.load %arg2[%c0, %c0_0, %c0_1, %c0_2] : memref<1x1x18x4xf32, #tpu.memory_space<vmem>>, vector<1x1x16x4xf32>
    %1 = vector.shape_cast %0 : vector<1x1x16x4xf32> to vector<16x4xf32>
    %c0_3 = arith.constant 0 : index
    %c0_4 = arith.constant 0 : index
    %c1 = arith.constant 1 : index
    %c0_5 = arith.constant 0 : index
    %2 = vector.load %arg2[%c0_3, %c0_4, %c1, %c0_5] : memref<1x1x18x4xf32, #tpu.memory_space<vmem>>, vector<1x1x16x4xf32>
    %3 = vector.shape_cast %2 : vector<1x1x16x4xf32> to vector<16x4xf32>
    %c0_6 = arith.constant 0 : index
    %c0_7 = arith.constant 0 : index
    %c2 = arith.constant 2 : index
    %c0_8 = arith.constant 0 : index
    %4 = vector.load %arg2[%c0_6, %c0_7, %c2, %c0_8] : memref<1x1x18x4xf32, #tpu.memory_space<vmem>>, vector<1x1x16x4xf32>
    %5 = vector.shape_cast %4 : vector<1x1x16x4xf32> to vector<16x4xf32>
    %6 = tpu.concatenate %1, %3, %5 in 1 : vector<16x4xf32>, vector<16x4xf32>, vector<16x4xf32> -> vector<16x12xf32>
    %c0_9 = arith.constant 0 : index
    %c0_10 = arith.constant 0 : index
    %7 = vector.load %arg3[%c0_9, %c0_10] : memref<12x128xf32, #tpu.memory_space<vmem>>, vector<12x128xf32>
    %cst = arith.constant dense<0.000000e+00> : vector<16x128xf32>
    %8 = tpu.matmul %6, %7, %cst {dimension_numbers = #tpu.dot_dimension_numbers<[1], [0], [0], [1], [0, 0, 1, 1], [], []>} : vector<16x12xf32>, vector<12x128xf32>, vector<16x128xf32> -> vector<16x128xf32>
    %c0_11 = arith.constant 0 : index
    %c0_12 = arith.constant 0 : index
    %9 = vector.load %arg4[%c0_11, %c0_12] : memref<1x128xf32, #tpu.memory_space<vmem>>, vector<1x128xf32>
    %10 = vector.broadcast %9 : vector<1x128xf32> to vector<16x128xf32>
    %11 = arith.addf %8, %10 : vector<16x128xf32>
    %c0_13 = arith.constant 0 : index
    %c0_14 = arith.constant 0 : index
    %c0_15 = arith.constant 0 : index
    %12 = vector.load %arg5[%c0_13, %c0_14, %c0_15] : memref<1x16x128xf32, #tpu.memory_space<vmem>>, vector<1x16x128xf32>
    %13 = vector.shape_cast %12 : vector<1x16x128xf32> to vector<16x128xf32>
    %14 = vector.shape_cast %11 : vector<16x128xf32> to vector<1x16x128xf32>
    tpu.vector_store %arg5[%c0_13, %c0_14, %c0_15], %14 {strides = array<i32>} : memref<1x16x128xf32, #tpu.memory_space<vmem>>, vector<1x16x128xf32>,
    return
  }
  func.func @transform_0(%arg0: i32, %arg1: i32) -> (i32, i32, i32, i32) {
    %c0_i32 = arith.constant 0 : i32
    %c0_i32_0 = arith.constant 0 : i32
    %c0_i32_1 = arith.constant 0 : i32
    return %arg0, %arg1, %c0_i32, %c0_i32_0 : i32, i32, i32, i32
  }
  func.func @transform_1(%arg0: i32, %arg1: i32) -> (i32, i32) {
    %c0_i32 = arith.constant 0 : i32
    %c0_i32_0 = arith.constant 0 : i32
    %c0_i32_1 = arith.constant 0 : i32
    return %c0_i32, %c0_i32_0 : i32, i32
  }
  func.func @transform_2(%arg0: i32, %arg1: i32) -> (i32, i32) {
    %c0_i32 = arith.constant 0 : i32
    %c0_i32_0 = arith.constant 0 : i32
    %c0_i32_1 = arith.constant 0 : i32
    return %c0_i32, %c0_i32_0 : i32, i32
  }
  func.func @transform_3(%arg0: i32, %arg1: i32) -> (i32, i32, i32) {
    %c0_i32 = arith.constant 0 : i32
    %c0_i32_0 = arith.constant 0 : i32
    return %arg0, %arg1, %c0_i32 : i32, i32, i32
  }
}

</mosaic_0001>

<bundles_post_ra>
// kernel: tpu_custom_call.1
= control target key start
LH: loop header
LB: loop body
LE: loop exit
PB: predicated region body
PF: predicated region fallthrough
CT: control target
= control target key end

     0   :  { %8 = vsyncpa [#allocation3], 0  ;;  %s736_s0 = inlined_call_operand.vmem [shape: f32[2,1,18,4], index: 0, kind: input, shape index: {}]   ;;  %s737_s1 = inlined_call_operand.vmem [shape: f32[12,128], index: 1, kind: input, shape index: {}]   ;;  %s738_s2 = inlined_call_operand.vmem [shape: f32[1,128], index: 2, kind: input, shape index: {}]   ;;  %s739_s3 = inlined_call_operand.hbm [shape: f32[2,16,128], index: 3, kind: output, shape index: {}]  }
   0x1   :  { %10 = vsyncpa [#allocation3 + $0x1], 0  ;;  %s610_s12 = smov 0   ;;  %s612_s13 = smov 0  }
   0x2   :  { %s614_s14 = smov 0   ;;  %s616_s15 = smov 0  }
   0x3   :  { %s618_s16 = smov 0   ;;  %s620_s17 = smov 0  }
   0x4 LB: > { %s421_s18 = sadd.s32 4294967295, %s584_s17   ;;  %s422_s19 = sadd.s32 4294967294, %s584_s17   ;;  %s584_s17 = sphi %s620_s17, %s16_s17   ;;  %s580_s16 = sphi %s618_s16, %s746_s16   ;;  %s576_s15 = sphi %s616_s15, %s745_s15   ;;  %s572_s14 = sphi %s614_s14, %s744_s14   ;;  %s568_s13 = sphi %s612_s13, %s743_s13   ;;  %s564_s12 = sphi %s610_s12, %s742_s12  }
   0x5   : > { %s28_s20 = sadd.s32 1, %s580_s16  ;;  %s107_s21 = sadd.s32 1, %s572_s14 }
   0x6   : > { %p30_p0 = scmp.ge.s32.totalorder %s28_s20, 2  ;;  %p117_p1 = scmp.ne.s32.totalorder %s572_s14, %s568_s13 }
   0x7   : > { %p118_p2 = scmp.eq.s32.totalorder %s421_s18, 1  ;;  %p123_p3 = scmp.ne.s32.totalorder %s568_s13, %s564_s12 }
   0x8   : > { %s748_s20 = smov (%p30_p0, %s28_s20), 0  ;;  %p124_p5 = scmp.eq.s32.totalorder %s422_s19, 1 }
   0x9   : > { %p650_p4 = por %p118_p2, %p117_p1  ;;  %s102_s23 = ssub.s32 %s580_s16, %s748_s20 }
   0xa   : > { %p425_p6 = scmp.ge.s32.totalorder %s584_s17, 1  ;;  %p105_p7 = scmp.eq.s32.totalorder %s102_s23, 0 }
   0xb   : > { %p657_p8 = por %p124_p5, %p123_p3  ;;  %p160_p9 = scmp.lt.s32.totalorder %s584_s17, 3 }
   0xc   : > { %s663_s25 = scalar_select %p105_p7, %s572_s14, %s107_s21  }
   0xd   : > { %p161_p10 = pnand %p425_p6, %p160_p9 }
   0xe   : > { %p188_p11 = scmp.lt.s32.totalorder (!%p161_p10), %s576_s15, 1  ;;  %s586_s8 = smov (!%p161_p10), 4  }
   0xf   : > { %164 = sbr.rel (%p161_p10) target bundleno = 358 (0x166), region = 32  ;;  %s587_s9 = smov (!%p161_p10), 8  }
  0x10   : > { %s185_s10 = sand.u32 (!%p161_p10), 1, %s568_s13   ;;  %s437_s26 = sshll.u32 (!%p161_p10), %s576_s15, 8 }
  0x11   : > { %s426_s11 = sshll.u32 (!%p161_p10), %s185_s10, 4  ;;  %s688_s29 = scalar_lea.hbm (!%p161_p10), %s739_s3, %s437_s26 }
  0x12   : > { %s187_s21 = scalar_lea.vmem (!%p161_p10), [#allocation2], %s426_s11 }
  0x13   : > { %s339_s23 = sshll.u32 (!%p161_p10), %s187_s21, 4  ;;  %s683_s23 = int_to_ptr.vmem [resolvable:$true] %s339_s23 }
  0x14   : > { %v227_v0 = vld [vmem:[%s737_s1 + $0x8] sm:$0xf]  ;;  %vm242_vm0 = vcmask 1043456   ;;  %v226_v1 = vld [vmem:[%s737_s1] sm:$0xff]  ;;  %s189_s30 = scalar_select %p188_p11, %s576_s15, 1  ;;  %vm220_vm1 = vcmask 31744  }
  0x15   : > { %442 = vmatprep.subr.msk.mxu0 %vm242_vm0, %v227_v0  ;;  %vm223_vm2 = vcmask 64512   ;;  %vm235_vm3 = vcmask 97280   ;;  %v428_v16 = vld [vmem:[%s738_s2] ss:$0 sm:$0xff]  ;;  %s588_s15 = smov [#allocation2]  }
  0x16   : > { %443 = vmatpush3.msk.msra.mxu0 %vm242_vm0, %v227_v0  ;;  %s449_s4 = smul.u32 24, %s189_s30  ;;  %s690_s30 = scalar_lea.sflag [#allocation3], %s185_s10 }
  0x17   : > { %444 = vmatprep.subr.mxu0 %v226_v1  ;;  %s512_s5 = sshll.u32 %s588_s15, 4  ;;  %s513_s5 = int_to_ptr.vmem [resolvable:$false] %s512_s5 }
  0x18   : > { %445 = vmatpush3.msra.mxu0 %v226_v1  ;;  %s196_s7 = scalar_lea.vmem %s736_s0, %s449_s4  ;;  %s508_s4 = scalar_lea.vmem %s683_s23, 256 }
  0x19   : > { %v200_v2 = vld [vmem:[%s196_s7 + $0x1] sm:$0xff]  ;;  %v201_v4 = vld [vmem:[%s196_s7 + $0x9] sm:$0xff]  ;;  %p509_p12 = scmp.ne.s32.totalorder %s683_s23, %s508_s4  ;;  %s514_s6 = scalar_lea.vmem %s513_s5, 512 }
  0x1a   : > { %v202_v3 = vld [vmem:[%s196_s7 + $0x2] sm:$0xff]  ;;  %206 = vrot.lane.b32.xlu0 %v200_v2, %s586_s8  ;;  %v203_v5 = vld [vmem:[%s196_s7 + $0xa] sm:$0xff]  ;;  %p515_p1 = scmp.lt.s32.totalorder %s683_s23, %s513_s5  ;;  %p516_p2 = scmp.lt.s32.totalorder %s514_s6, %s508_s4 }
  0x1b   : > { %214 = vrot.lane.b32.xlu1 %v202_v3, %s587_s9  ;;  %v198_v6 = vld [vmem:[%s196_s7] sm:$0xff]  ;;  %v199_v11 = vld [vmem:[%s196_s7 + $0x8] sm:$0xff]  ;;  %p510_p13 = pnand %p509_p12, %p650_p4 }
  0x1c   : > { %p517_p3 = por %p516_p2, %p515_p1 }
  0x1d   : > { %p511_p0 = pneg %p510_p13 }
  0x1e   : > { %208 = vrot.lane.b32.xlu0 %v201_v4, %s586_s8 }
  0x1f   : > { %216 = vrot.lane.b32.xlu1 %v203_v5, %s587_s9  ;;  %p518_p5 = pnand %p517_p3, %p511_p0 }
  0x8c   : > { %v207_v7 = vpop.permute.xlu0 %206 }
  0x8d   : > { %v215_v8 = vpop.permute.xlu1 %214  ;;  %v221_v9 = vsel %vm220_vm1, %v198_v6, %v207_v7 }
  0x8e   : > { %v224_v10 = vsel %vm223_vm2, %v221_v9, %v215_v8 }
  0x8f   : > { %446 = vmatprep.mubr.msk.f32.mxu0 %vm235_vm3, %v224_v10 }
  0x90   : > { %v209_v12 = vpop.permute.xlu0 %208 }
  0x91   : > { %v217_v13 = vpop.permute.xlu1 %216  ;;  %v222_v14 = vsel %vm220_vm1, %v199_v11, %v209_v12 }
  0x92   : > { %v225_v15 = vsel %vm223_vm2, %v222_v14, %v217_v13 }
  0x93   : > { %447 = vmatmul.mubr.msk.f32.vlgmr.msra.gmra.mxu0 %vm235_vm3, %v225_v15 }
 0x153   : > { %v448_v17 = vpop.f32.mrf.mxu0 }
 0x154   : > { %v318_v18 = vadd.f32 %v448_v17, %v428_v16 }
 0x155   : > { %v312_v19 = vpop.f32.mrf.mxu0 }
 0x156   : > { %322 = vst [vmem:[%s187_s21 + $0x8] sm:$0xff] %v318_v18  ;;  %v313_v20 = vadd.f32 %v428_v16, %v312_v19 }
 0x158   : > { %321 = vst [vmem:[%s187_s21] sm:$0xff] %v313_v20 }
 0x159   : > { %521 = shalt.err (!%p518_p5)
}
 0x15a   : > { %s522_s7 = scalar_lea.hbm %s688_s29, 256  ;;  %s526_s11 = scalar_lea.hbm %s739_s3, 512 }
 0x15b   : > { %p523_p6 = scmp.ne.s32.totalorder %s688_s29, %s522_s7  ;;  %p527_p10 = scmp.lt.s32.totalorder %s688_s29, %s739_s3 }
 0x15c   : > { %p528_p11 = scmp.lt.s32.totalorder %s526_s11, %s522_s7 }
 0x15d   : > { %p524_p7 = pnand %p523_p6, %p650_p4 }
 0x15e   : > { %p529_p12 = por %p528_p11, %p527_p10 }
 0x15f   : > { %p525_p9 = pneg %p524_p7 }
 0x161   : > { %p530_p13 = pnand %p529_p12, %p525_p9 }
 0x163   : > { %533 = shalt.err (!%p530_p13)
}
 0x164   : > { %s589_s21 = smov 128  }
 0x165   : > { %450 = dma.vmem_to_hbm [thread:$0]  (%p650_p4), %s683_s23, 256, %s688_s29, %s690_s30, %s589_s21, %s589_s21, %s587_s9  }
 0x166 PF: > { %p456_p0 = scmp.ge.s32.totalorder %s584_s17, 2  ;;  %s354_s26 = sand.u32 1, %s564_s12  }
 0x167   : > { %s355_s27 = scalar_lea.sflag [#allocation3], %s354_s26 }
 0x168   : > { %p453_p1 = pnand %p456_p0, %p657_p8 }
 0x16a   : > { %p454_p2 = pneg %p453_p1 }
 0x16c   : > { %559 = dma.done.wait (%p454_p2), %s355_s27, 256  }
 0x16d   : > { %561 = vsyncadd (%p454_p2), %s355_s27, 4294967040  ;;  %s16_s17 = sadd.s32 1, %s584_s17   ;;  %s742_s12 = smov %s568_s13 }
 0x16e   : > { %p13_p3 = scmp.ge.s32.totalorder %s16_s17, 4   ;;  %s743_s13 = smov %s572_s14 }
 0x16f   : > { %s744_s14 = smov %s663_s25  ;;  %s745_s15 = smov %s580_s16 }
 0x170   : > { %s746_s16 = smov %s748_s20  ;;  %15 = sbr.rel (!%p13_p3) target bundleno = 4 (0x4), region = 67 }
 0x175   :  { %360 = vsyncpa [#allocation3], 1 }
 0x176   :  { %362 = vsyncpa [#allocation3 + $0x1], 1 }

</bundles_post_ra>
